<compile_context>
chip_gen: v7x
topology: tpu7x:2x2x1
jax: 0.10.0
libtpu: 0.0.40
codegen_flags: <defaults>
</compile_context>

<pallas_src>
import functools

import jax
import jax.numpy as jnp
from jax.experimental import pallas as pl
from jax.experimental.pallas import tpu as pltpu


# --------------------------------------------------------------------------- #
# Kernel
# --------------------------------------------------------------------------- #
def _irnn_kernel(wb_ref, mask_ref, x_ref, up_ref, right_ref, down_ref, left_ref,
                 *, H, W):
    # wb_ref   : VMEM (R_BLK, 8) f32  -> [w_up, w_right, w_down, w_left, b_up..b_left]
    # mask_ref : VMEM (4, H*W) int32  -> 1 where the output keeps x unchanged
    # x_ref / outs : VMEM (R_BLK, H*W), one flattened image per row
    HW = H * W
    x = x_ref[...].astype(jnp.float32)
    wb = wb_ref[...]

    def conv(d):
        # depthwise 1x1 conv == per-row scale + bias (lane-broadcast of a column)
        return wb[:, d:d + 1] * x + wb[:, 4 + d:5 + d]

    # Precomputed boundary masks (broadcast over rows).
    top_row = mask_ref[0:1, :] != 0     # image row h == 0     (up)
    last_col = mask_ref[1:2, :] != 0    # image col w == W-1   (right)
    bot_row = mask_ref[2:3, :] != 0     # image row h == H-1   (down)
    first_col = mask_ref[3:4, :] != 0   # image col w == 0     (left)

    # up:    top_up[i]    = relu(conv_up[i - W]    + x[i])  (keep x on row 0)
    up_full = jnp.maximum(pltpu.roll(conv(0), shift=W, axis=1) + x, 0.0)
    up_ref[...] = jnp.where(top_row, x, up_full).astype(up_ref.dtype)

    # right: top_right[i] = relu(conv_right[i + 1] + x[i])  (keep x on col W-1)
    right_full = jnp.maximum(pltpu.roll(conv(1), shift=HW - 1, axis=1) + x, 0.0)
    right_ref[...] = jnp.where(last_col, x, right_full).astype(right_ref.dtype)

    # down:  top_down[i]  = relu(conv_down[i + W]  + x[i])  (keep x on row H-1)
    down_full = jnp.maximum(pltpu.roll(conv(2), shift=HW - W, axis=1) + x, 0.0)
    down_ref[...] = jnp.where(bot_row, x, down_full).astype(down_ref.dtype)

    # left:  top_left[i]  = relu(conv_left[i - 1]  + x[i])  (keep x on col 0)
    left_full = jnp.maximum(pltpu.roll(conv(3), shift=1, axis=1) + x, 0.0)
    left_ref[...] = jnp.where(first_col, x, left_full).astype(left_ref.dtype)


# --------------------------------------------------------------------------- #
# Block sizing
# --------------------------------------------------------------------------- #
def _vmem_budget():
    """Return (vmem_limit_bytes, target x-block bytes) for the current chip."""
    try:
        cap = pltpu.get_tpu_info().vmem_capacity_bytes
    except Exception:
        cap = 64 << 20  # be conservative (v7x has 64 MiB / TC)
    if cap >= (100 << 20):          # v5e / v6e: 128 MiB per TensorCore
        return 64 << 20, 4 << 20
    return 48 << 20, 3 << 20        # v7x: 64 MiB per TensorCore


def _pick_blocking(num_rows, hw, itemsize, sub, vmem_limit, target_block_bytes):
    """Pick (padded_rows, block_rows) for the (N*C, H*W) slab.

    VMEM accounting per pipeline buffer set (everything double-buffered):
      x block + 4 output blocks (hw lanes each, itemsize bytes)
      + the (rows, 8) f32 wb block, which pads to 128 lanes in VMEM.
    We keep 2 * that total under ~2/3 of vmem_limit (headroom for the tiny
    mask block, semaphores and compiler scratch) and additionally cap the
    x block at ~target_block_bytes (the measured HBM-roofline plateau).
    """
    per_row = 5 * hw * itemsize + 128 * 4
    budget = (vmem_limit * 2) // 3
    max_rows = (budget // (2 * per_row)) // sub * sub
    cap_rows = (target_block_bytes // max(hw * itemsize, 1)) // sub * sub
    max_rows = max(sub, min(max_rows, max(cap_rows, sub)))

    if num_rows <= max_rows:
        # Whole tensor fits in one block; split in two when cheaply possible so
        # a v7x megacore (2 TensorCores) gets parallel grid steps.
        if num_rows % (2 * sub) == 0 and (num_rows // 2) * hw * itemsize >= (1 << 20):
            return num_rows, num_rows // 2
        return num_rows, num_rows

    # Prefer an exact divisor with an even grid count (megacore-friendly).
    best_odd = None
    start = min(max_rows, (num_rows // sub) * sub)
    for rr in range(start, sub - 1, -sub):
        if num_rows % rr == 0:
            if (num_rows // rr) % 2 == 0:
                return num_rows, rr
            if best_odd is None:
                best_odd = rr
    if best_odd is not None:
        return num_rows, best_odd

    # Awkward row count: pad rows up so a target-sized block divides evenly
    # (pad rows are zeros and sliced off after the call).
    rr = max_rows
    padded = ((num_rows + rr - 1) // rr) * rr
    return padded, rr


# --------------------------------------------------------------------------- #
# Wrapper
# --------------------------------------------------------------------------- #
@functools.partial(jax.jit, static_argnames=("block_rows",))
def irnn_layer_forward(x, w, b, block_rows=None):
    """x: (N, C, H, W); w, b: (4, C) f32 in order [up, right, down, left].

    Returns (top_up, top_right, top_down, top_left), each (N, C, H, W).
    """
    N, C, H, W = x.shape
    HW = H * W
    R = N * C
    itemsize = jnp.dtype(x.dtype).itemsize
    sub = max(8, 32 // itemsize)            # sublane multiple: 8 f32 / 16 bf16

    vmem_limit, target_block_bytes = _vmem_budget()
    if block_rows is None:
        R_pad, block_rows = _pick_blocking(R, HW, itemsize, sub, vmem_limit,
                                           target_block_bytes)
    else:
        R_pad = ((R + block_rows - 1) // block_rows) * block_rows
    grid = (R_pad // block_rows,)

    # Flattened-spatial view: row r = n*C + c holds image (n, c).
    x2 = x.reshape(R, HW)
    # Lane-packed per-row scale/bias: (R, 8) = [w_up..w_left, b_up..b_left].
    w_rows = jnp.tile(w.astype(jnp.float32).T, (N, 1))   # (R, 4)
    b_rows = jnp.tile(b.astype(jnp.float32).T, (N, 1))   # (R, 4)
    wb = jnp.concatenate([w_rows, b_rows], axis=1)       # (R, 8)
    if R_pad != R:
        x2 = jnp.pad(x2, ((0, R_pad - R), (0, 0)))
        wb = jnp.pad(wb, ((0, R_pad - R), (0, 0)))

    # Precomputed boundary masks (1 where the output keeps x), order
    # [up:row0, right:colW-1, down:rowH-1, left:col0].
    lane = jnp.arange(HW, dtype=jnp.int32)
    col = lane % W
    masks = jnp.stack([
        (lane < W).astype(jnp.int32),
        (col == W - 1).astype(jnp.int32),
        (lane >= HW - W).astype(jnp.int32),
        (col == 0).astype(jnp.int32),
    ], axis=0)                                            # (4, HW)

    row_spec = pl.BlockSpec((block_rows, HW), lambda i: (i, 0))
    wb_spec = pl.BlockSpec((block_rows, 8), lambda i: (i, 0))
    mask_spec = pl.BlockSpec((4, HW), lambda i: (0, 0))
    out_sds = jax.ShapeDtypeStruct((R_pad, HW), x.dtype)

    cost = pl.CostEstimate(
        flops=16 * R_pad * HW,                       # 4 dirs x (mul + 2 adds + max)
        transcendentals=0,
        bytes_accessed=(1 + 4) * R_pad * HW * itemsize + R_pad * 8 * 4 + 4 * HW * 4,
    )

    outs = pl.pallas_call(
        functools.partial(_irnn_kernel, H=H, W=W),
        out_shape=(out_sds, out_sds, out_sds, out_sds),
        grid_spec=pltpu.PrefetchScalarGridSpec(
            num_scalar_prefetch=0,
            grid=grid,
            in_specs=[wb_spec, mask_spec, row_spec],
            out_specs=[row_spec, row_spec, row_spec, row_spec],
        ),
        compiler_params=pltpu.CompilerParams(
            dimension_semantics=("parallel",),
            vmem_limit_bytes=vmem_limit,
        ),
        cost_estimate=cost,
    )(wb, masks, x2)

    def unflatten(o):
        if R_pad != R:
            o = o[:R]
        return o.reshape(N, C, H, W)

    return tuple(unflatten(o) for o in outs)


# --------------------------------------------------------------------------- #
# Pure-JAX reference (matches the PyTorch forward exactly)
# --------------------------------------------------------------------------- #
def _reference_forward(x, w, b):
    _, _, H, W = x.shape

    def conv(d):
        return w[d][None, :, None, None] * x + b[d][None, :, None, None]

    cu, cr, cd, cl = conv(0), conv(1), conv(2), conv(3)
    top_up = x.at[:, :, 1:, :].set(
        jnp.maximum(cu[:, :, :H - 1, :] + x[:, :, 1:, :], 0.0))
    top_right = x.at[:, :, :, :W - 1].set(
        jnp.maximum(cr[:, :, :, 1:] + x[:, :, :, :W - 1], 0.0))
    top_down = x.at[:, :, :H - 1, :].set(
        jnp.maximum(cd[:, :, 1:, :] + x[:, :, :H - 1, :], 0.0))
    top_left = x.at[:, :, :, 1:].set(
        jnp.maximum(cl[:, :, :, :W - 1] + x[:, :, :, 1:], 0.0))
    return top_up, top_right, top_down, top_left


if __name__ == "__main__":
    N, C, H, W = 2, 4, 16, 16

    key = jax.random.PRNGKey(0)
    kx, kw, kb = jax.random.split(key, 3)

    x = jax.random.normal(kx, (N, C, H, W), dtype=jnp.float32)
    # Each Conv2d(C, C, 1, groups=C) has weight (C,1,1,1) and bias (C,);
    # flatten to per-channel scale/bias, stacked as [up, right, down, left].
    w = jax.random.normal(kw, (4, C), dtype=jnp.float32) * 0.5
    b = jax.random.normal(kb, (4, C), dtype=jnp.float32) * 0.1

    outs = irnn_layer_forward(x, w, b)
    outs = jax.block_until_ready(outs)

    refs = _reference_forward(x, w, b)
    for o, r in zip(outs, refs):
        assert o.shape == (N, C, H, W)
        assert jnp.allclose(o, r, atol=1e-5, rtol=1e-5)

    print("KERNEL_OK")
</pallas_src>

<mosaic_0001>
module attributes {stable_mosaic.version = 11 : i64} {
  func.func @_irnn_kernel(%arg0: i32, %arg1: memref<8x8xf32, #tpu.memory_space<vmem>>, %arg2: memref<4x256xi32, #tpu.memory_space<vmem>>, %arg3: memref<8x256xf32, #tpu.memory_space<vmem>>, %arg4: memref<8x256xf32, #tpu.memory_space<vmem>>, %arg5: memref<8x256xf32, #tpu.memory_space<vmem>>, %arg6: memref<8x256xf32, #tpu.memory_space<vmem>>, %arg7: memref<8x256xf32, #tpu.memory_space<vmem>>) attributes {dimension_semantics = [#tpu.dimension_semantics<parallel>], iteration_bounds = array<i64: 1>, scalar_prefetch = 0 : i64, scratch_operands = 0 : i64, tpu.core_type = #tpu.core_type<tc>, window_params = [{transform_indices = @transform_0, window_bounds = array<i64: 8, 8>}, {pipeline_mode = #tpu.pipeline_mode<synchronous>, transform_indices = @transform_1, window_bounds = array<i64: 4, 256>}, {transform_indices = @transform_2, window_bounds = array<i64: 8, 256>}, {transform_indices = @transform_3, window_bounds = array<i64: 8, 256>}, {transform_indices = @transform_4, window_bounds = array<i64: 8, 256>}, {transform_indices = @transform_5, window_bounds = array<i64: 8, 256>}, {transform_indices = @transform_6, window_bounds = array<i64: 8, 256>}]} {
    %c0 = arith.constant 0 : index
    %c0_0 = arith.constant 0 : index
    %0 = vector.load %arg3[%c0, %c0_0] : memref<8x256xf32, #tpu.memory_space<vmem>>, vector<8x256xf32>
    %c0_1 = arith.constant 0 : index
    %c0_2 = arith.constant 0 : index
    %1 = vector.load %arg1[%c0_1, %c0_2] : memref<8x8xf32, #tpu.memory_space<vmem>>, vector<8x8xf32>
    %c0_3 = arith.constant 0 : index
    %c0_4 = arith.constant 0 : index
    %2 = vector.load %arg2[%c0_3, %c0_4] : memref<4x256xi32, #tpu.memory_space<vmem>>, vector<1x256xi32>
    %c0_i32 = arith.constant 0 : i32
    %3 = vector.broadcast %c0_i32 : i32 to vector<1x256xi32>
    %4 = arith.cmpi ne, %2, %3 : vector<1x256xi32>
    %c1 = arith.constant 1 : index
    %c0_5 = arith.constant 0 : index
    %5 = vector.load %arg2[%c1, %c0_5] : memref<4x256xi32, #tpu.memory_space<vmem>>, vector<1x256xi32>
    %c0_i32_6 = arith.constant 0 : i32
    %6 = vector.broadcast %c0_i32_6 : i32 to vector<1x256xi32>
    %7 = arith.cmpi ne, %5, %6 : vector<1x256xi32>
    %c2 = arith.constant 2 : index
    %c0_7 = arith.constant 0 : index
    %8 = vector.load %arg2[%c2, %c0_7] : memref<4x256xi32, #tpu.memory_space<vmem>>, vector<1x256xi32>
    %c0_i32_8 = arith.constant 0 : i32
    %9 = vector.broadcast %c0_i32_8 : i32 to vector<1x256xi32>
    %10 = arith.cmpi ne, %8, %9 : vector<1x256xi32>
    %c3 = arith.constant 3 : index
    %c0_9 = arith.constant 0 : index
    %11 = vector.load %arg2[%c3, %c0_9] : memref<4x256xi32, #tpu.memory_space<vmem>>, vector<1x256xi32>
    %c0_i32_10 = arith.constant 0 : i32
    %12 = vector.broadcast %c0_i32_10 : i32 to vector<1x256xi32>
    %13 = arith.cmpi ne, %11, %12 : vector<1x256xi32>
    %14 = vector.extract_strided_slice %1 {offsets = [0, 0], sizes = [8, 1], strides = [1, 1]} : vector<8x8xf32> to vector<8x1xf32>
    %15 = vector.broadcast %14 : vector<8x1xf32> to vector<8x256xf32>
    %16 = arith.mulf %15, %0 : vector<8x256xf32>
    %17 = vector.extract_strided_slice %1 {offsets = [0, 4], sizes = [8, 1], strides = [1, 1]} : vector<8x8xf32> to vector<8x1xf32>
    %18 = vector.broadcast %17 : vector<8x1xf32> to vector<8x256xf32>
    %19 = arith.addf %16, %18 : vector<8x256xf32>
    %c16_i32 = arith.constant 16 : i32
    %20 = tpu.dynamic_rotate %19 by %c16_i32 dim 1 : vector<8x256xf32>, i32 -> vector<8x256xf32>
    %21 = arith.addf %20, %0 : vector<8x256xf32>
    %cst = arith.constant 0.000000e+00 : f32
    %22 = vector.broadcast %cst : f32 to vector<8x256xf32>
    %23 = arith.maximumf %21, %22 : vector<8x256xf32>
    %24 = vector.shape_cast %4 : vector<1x256xi1> to vector<1x256xi1>
    %25 = vector.broadcast %24 : vector<1x256xi1> to vector<8x256xi1>
    %26 = arith.select %25, %0, %23 : vector<8x256xi1>, vector<8x256xf32>
    %c0_11 = arith.constant 0 : index
    %c0_12 = arith.constant 0 : index
    %27 = vector.load %arg4[%c0_11, %c0_12] : memref<8x256xf32, #tpu.memory_space<vmem>>, vector<8x256xf32>
    tpu.vector_store %arg4[%c0_11, %c0_12], %26 {strides = array<i32>} : memref<8x256xf32, #tpu.memory_space<vmem>>, vector<8x256xf32>,
    %28 = vector.extract_strided_slice %1 {offsets = [0, 1], sizes = [8, 1], strides = [1, 1]} : vector<8x8xf32> to vector<8x1xf32>
    %29 = vector.broadcast %28 : vector<8x1xf32> to vector<8x256xf32>
    %30 = arith.mulf %29, %0 : vector<8x256xf32>
    %31 = vector.extract_strided_slice %1 {offsets = [0, 5], sizes = [8, 1], strides = [1, 1]} : vector<8x8xf32> to vector<8x1xf32>
    %32 = vector.broadcast %31 : vector<8x1xf32> to vector<8x256xf32>
    %33 = arith.addf %30, %32 : vector<8x256xf32>
    %c255_i32 = arith.constant 255 : i32
    %34 = tpu.dynamic_rotate %33 by %c255_i32 dim 1 : vector<8x256xf32>, i32 -> vector<8x256xf32>
    %35 = arith.addf %34, %0 : vector<8x256xf32>
    %cst_13 = arith.constant 0.000000e+00 : f32
    %36 = vector.broadcast %cst_13 : f32 to vector<8x256xf32>
    %37 = arith.maximumf %35, %36 : vector<8x256xf32>
    %38 = vector.shape_cast %7 : vector<1x256xi1> to vector<1x256xi1>
    %39 = vector.broadcast %38 : vector<1x256xi1> to vector<8x256xi1>
    %40 = arith.select %39, %0, %37 : vector<8x256xi1>, vector<8x256xf32>
    %c0_14 = arith.constant 0 : index
    %c0_15 = arith.constant 0 : index
    %41 = vector.load %arg5[%c0_14, %c0_15] : memref<8x256xf32, #tpu.memory_space<vmem>>, vector<8x256xf32>
    tpu.vector_store %arg5[%c0_14, %c0_15], %40 {strides = array<i32>} : memref<8x256xf32, #tpu.memory_space<vmem>>, vector<8x256xf32>,
    %42 = vector.extract_strided_slice %1 {offsets = [0, 2], sizes = [8, 1], strides = [1, 1]} : vector<8x8xf32> to vector<8x1xf32>
    %43 = vector.broadcast %42 : vector<8x1xf32> to vector<8x256xf32>
    %44 = arith.mulf %43, %0 : vector<8x256xf32>
    %45 = vector.extract_strided_slice %1 {offsets = [0, 6], sizes = [8, 1], strides = [1, 1]} : vector<8x8xf32> to vector<8x1xf32>
    %46 = vector.broadcast %45 : vector<8x1xf32> to vector<8x256xf32>
    %47 = arith.addf %44, %46 : vector<8x256xf32>
    %c240_i32 = arith.constant 240 : i32
    %48 = tpu.dynamic_rotate %47 by %c240_i32 dim 1 : vector<8x256xf32>, i32 -> vector<8x256xf32>
    %49 = arith.addf %48, %0 : vector<8x256xf32>
    %cst_16 = arith.constant 0.000000e+00 : f32
    %50 = vector.broadcast %cst_16 : f32 to vector<8x256xf32>
    %51 = arith.maximumf %49, %50 : vector<8x256xf32>
    %52 = vector.shape_cast %10 : vector<1x256xi1> to vector<1x256xi1>
    %53 = vector.broadcast %52 : vector<1x256xi1> to vector<8x256xi1>
    %54 = arith.select %53, %0, %51 : vector<8x256xi1>, vector<8x256xf32>
    %c0_17 = arith.constant 0 : index
    %c0_18 = arith.constant 0 : index
    %55 = vector.load %arg6[%c0_17, %c0_18] : memref<8x256xf32, #tpu.memory_space<vmem>>, vector<8x256xf32>
    tpu.vector_store %arg6[%c0_17, %c0_18], %54 {strides = array<i32>} : memref<8x256xf32, #tpu.memory_space<vmem>>, vector<8x256xf32>,
    %56 = vector.extract_strided_slice %1 {offsets = [0, 3], sizes = [8, 1], strides = [1, 1]} : vector<8x8xf32> to vector<8x1xf32>
    %57 = vector.broadcast %56 : vector<8x1xf32> to vector<8x256xf32>
    %58 = arith.mulf %57, %0 : vector<8x256xf32>
    %59 = vector.extract_strided_slice %1 {offsets = [0, 7], sizes = [8, 1], strides = [1, 1]} : vector<8x8xf32> to vector<8x1xf32>
    %60 = vector.broadcast %59 : vector<8x1xf32> to vector<8x256xf32>
    %61 = arith.addf %58, %60 : vector<8x256xf32>
    %c1_i32 = arith.constant 1 : i32
    %62 = tpu.dynamic_rotate %61 by %c1_i32 dim 1 : vector<8x256xf32>, i32 -> vector<8x256xf32>
    %63 = arith.addf %62, %0 : vector<8x256xf32>
    %cst_19 = arith.constant 0.000000e+00 : f32
    %64 = vector.broadcast %cst_19 : f32 to vector<8x256xf32>
    %65 = arith.maximumf %63, %64 : vector<8x256xf32>
    %66 = vector.shape_cast %13 : vector<1x256xi1> to vector<1x256xi1>
    %67 = vector.broadcast %66 : vector<1x256xi1> to vector<8x256xi1>
    %68 = arith.select %67, %0, %65 : vector<8x256xi1>, vector<8x256xf32>
    %c0_20 = arith.constant 0 : index
    %c0_21 = arith.constant 0 : index
    %69 = vector.load %arg7[%c0_20, %c0_21] : memref<8x256xf32, #tpu.memory_space<vmem>>, vector<8x256xf32>
    tpu.vector_store %arg7[%c0_20, %c0_21], %68 {strides = array<i32>} : memref<8x256xf32, #tpu.memory_space<vmem>>, vector<8x256xf32>,
    return
  }
  func.func @transform_0(%arg0: i32) -> (i32, i32) {
    %c0_i32 = arith.constant 0 : i32
    %c0_i32_0 = arith.constant 0 : i32
    return %arg0, %c0_i32 : i32, i32
  }
  func.func @transform_1(%arg0: i32) -> (i32, i32) {
    %c0_i32 = arith.constant 0 : i32
    %c0_i32_0 = arith.constant 0 : i32
    %c0_i32_1 = arith.constant 0 : i32
    return %c0_i32, %c0_i32_0 : i32, i32
  }
  func.func @transform_2(%arg0: i32) -> (i32, i32) {
    %c0_i32 = arith.constant 0 : i32
    %c0_i32_0 = arith.constant 0 : i32
    return %arg0, %c0_i32 : i32, i32
  }
  func.func @transform_3(%arg0: i32) -> (i32, i32) {
    %c0_i32 = arith.constant 0 : i32
    %c0_i32_0 = arith.constant 0 : i32
    return %arg0, %c0_i32 : i32, i32
  }
  func.func @transform_4(%arg0: i32) -> (i32, i32) {
    %c0_i32 = arith.constant 0 : i32
    %c0_i32_0 = arith.constant 0 : i32
    return %arg0, %c0_i32 : i32, i32
  }
  func.func @transform_5(%arg0: i32) -> (i32, i32) {
    %c0_i32 = arith.constant 0 : i32
    %c0_i32_0 = arith.constant 0 : i32
    return %arg0, %c0_i32 : i32, i32
  }
  func.func @transform_6(%arg0: i32) -> (i32, i32) {
    %c0_i32 = arith.constant 0 : i32
    %c0_i32_0 = arith.constant 0 : i32
    return %arg0, %c0_i32 : i32, i32
  }
}

</mosaic_0001>

<bundles_post_ra>
// kernel: irnn_layer_forward.1
= control target key start
LH: loop header
LB: loop body
LE: loop exit
PB: predicated region body
PF: predicated region fallthrough
CT: control target
= control target key end

     0   :  { %v227_v0 = vmov 2   ;;  %v228_v1 = vmov 0   ;;  %v229_v3 = vmov 3   ;;  %v230_v4 = vmov 1   ;;  %s235_s26 = smov 16   ;;  %s237_s27 = smov 112   ;;  %s379_s0 = inlined_call_operand.vmem [shape: f32[8,8], index: 0, kind: input, shape index: {}]   ;;  %s380_s2 = inlined_call_operand.vmem [shape: f32[8,256], index: 2, kind: input, shape index: {}]   ;;  %s381_s1 = inlined_call_operand.vmem [shape: s32[4,256], index: 1, kind: input, shape index: {}]   ;;  %s382_s3 = inlined_call_operand.vmem [shape: f32[8,256], index: 3, kind: output, shape index: {0}]   ;;  %s383_s4 = inlined_call_operand.vmem [shape: f32[8,256], index: 4, kind: output, shape index: {1}]   ;;  %s384_s5 = inlined_call_operand.vmem [shape: f32[8,256], index: 5, kind: output, shape index: {2}]   ;;  %s385_s6 = inlined_call_operand.vmem [shape: f32[8,256], index: 6, kind: output, shape index: {3}]  }
   0x1   :  { %220 = vset.pattern.permute.xlu1 %v227_v0  ;;  %218 = vset.pattern.permute.xlu0 %v228_v1  ;;  %v20_v2 = vld [vmem:[%s379_s0] sm:$0xff]  ;;  %v231_v5 = vmov 4   ;;  %v232_v6 = vmov 5   ;;  %v233_v7 = vmov 6   ;;  %v234_v8 = vmov 7   ;;  %v286_v14 = vld [vmem:[%s380_s2 + $0x8] sm:$0xff] }
   0x2   :  { %112 = vperm.xlu1 %220, %v20_v2   ;;  %34 = vperm.xlu0 %218, %v20_v2   ;;  %v281_v13 = vld [vmem:[%s380_s2] sm:$0xff]  ;;  %s236_s2 = smov 127   ;;  %s238_s28 = smov 1   ;;  %v49_v35 = vlaneseq }
   0x3   :  { %v21_v36 = vld [vmem:[%s381_s1] ss:$4 sm:$0x3]  ;;  %v203_v39 = vld [vmem:[%s381_s1 + $0x1] ss:$4 sm:$0x3] }
   0x4   :  { %v60_v37 = vshrl.u32 %v49_v35, 7  ;;  %vm22_vm0 = vcmp.ne.s32.totalorder %v21_v36, 0  ;;  %v299_v38 = vand.u32 127, %v49_v35  ;;  %vm25_vm1 = vcmp.ne.s32.totalorder %v203_v39, 0 }
   0x5   :  { %v58_v42 = vsel %vm22_vm0, 1, %v228_v1  ;;  %v204_v43 = vld [vmem:[%s381_s1 + $0x2] ss:$4 sm:$0x3]  ;;  %v96_v48 = vsel %vm25_vm1, 1, %v228_v1 }
   0x6   :  { %221 = vset.pattern.permute.xlu1 %v229_v3  ;;  %219 = vset.pattern.permute.xlu0 %v230_v4  ;;  %v304_v40 = vsub.s32 0, %v60_v37  ;;  %v306_v41 = vsub.s32 1, %v60_v37  ;;  %vm51_vm2 = vcmp.lt.s32.totalorder %v299_v38, 16  ;;  %vm28_vm3 = vcmp.ne.s32.totalorder %v204_v43, 0 }
   0x7   :  { %150 = vperm.xlu1 %221, %v20_v2   ;;  %74 = vperm.xlu0 %219, %v20_v2   ;;  %vm89_vm4 = vcmp.lt.s32.totalorder %v299_v38, 127  ;;  %v205_v53 = vld [vmem:[%s381_s1 + $0x3] ss:$4 sm:$0x3]  ;;  %v134_v60 = vsel %vm28_vm3, 1, %v228_v1  ;;  %vm127_vm7 = vcmp.lt.s32.totalorder %v299_v38, 112 }
   0x8   :  { %v62_v44 = vrot.slane %v58_v42, %v304_v40  ;;  %v66_v45 = vrot.slane %v58_v42, %v306_v41  ;;  %v100_v54 = vrot.slane %v96_v48, %v304_v40  ;;  %v104_v55 = vrot.slane %v96_v48, %v306_v41 }
   0x9   :  { %vm31_vm8 = vcmp.ne.s32.totalorder %v205_v53, 0  ;;  %v138_v4 = vrot.slane %v134_v60, %v304_v40  ;;  %vm165_vm11 = vcmp.lt.s32.totalorder %v299_v38, 1 }
   0xa   :  { %vm67_vm5 = vcmp.eq.s32.totalorder %v62_v44, 1  ;;  %vm68_vm6 = vcmp.eq.s32.totalorder %v66_v45, 1  ;;  %vm105_vm9 = vcmp.eq.s32.totalorder %v100_v54, 1  ;;  %vm106_vm10 = vcmp.eq.s32.totalorder %v104_v55, 1 }
   0xb   :  { %222 = vset.pattern.permute.xlu1 %v231_v5  ;;  %223 = vset.pattern.permute.xlu0 %v232_v6  ;;  %v142_v5 = vrot.slane %v134_v60, %v306_v41  ;;  %vm143_vm12 = vcmp.eq.s32.totalorder %v138_v4, 1 }
   0xc   :  { %40 = vperm.xlu1 %222, %v20_v2   ;;  %80 = vperm.xlu0 %223, %v20_v2  }
   0xd   :  { %vm144_vm13 = vcmp.eq.s32.totalorder %v142_v5, 1 }
  0x10   :  { %224 = vset.pattern.permute.xlu1 %v233_v7  ;;  %226 = vset.pattern.permute.xlu0 %v234_v8 }
  0x11   :  { %118 = vperm.xlu1 %224, %v20_v2  }
  0x15   :  { %225 = vset.pattern.permute.xlu1 %v234_v8 }
  0x16   :  { %156 = vperm.xlu1 %225, %v20_v2  }
  0x81   :  { %v113_v9 = vpop.permute.xlu1 %112  ;;  %v35_v10 = vpop.permute.xlu0 %34 }
  0x82   :  { %v37_v15 = vmul.f32 %v35_v10, %v281_v13  ;;  %v38_v16 = vmul.f32 %v35_v10, %v286_v14  ;;  %v115_v26 = vmul.f32 %v113_v9, %v281_v13  ;;  %v116_v27 = vmul.f32 %v113_v9, %v286_v14 }
  0x83   :  { %v172_v10 = vsel %vm31_vm8, 1, %v228_v1 }
  0x84   :  { %v176_v1 = vrot.slane %v172_v10, %v304_v40 }
  0x86   :  { %v151_v11 = vpop.permute.xlu1 %150  ;;  %v75_v12 = vpop.permute.xlu0 %74  ;;  %vm181_vm14 = vcmp.eq.s32.totalorder %v176_v1, 1 }
  0x87   :  { %v77_v18 = vmul.f32 %v75_v12, %v281_v13  ;;  %v78_v19 = vmul.f32 %v75_v12, %v286_v14  ;;  %v153_v31 = vmul.f32 %v151_v11, %v281_v13  ;;  %v154_v32 = vmul.f32 %v151_v11, %v286_v14 }
  0x8b   :  { %v41_v17 = vpop.permute.xlu1 %40  ;;  %v81_v22 = vpop.permute.xlu0 %80 }
  0x8c   :  { %v43_v20 = vadd.f32 %v41_v17, %v37_v15  ;;  %v44_v21 = vadd.f32 %v41_v17, %v38_v16  ;;  %v83_v23 = vadd.f32 %v81_v22, %v77_v18  ;;  %v84_v24 = vadd.f32 %v81_v22, %v78_v19 }
  0x8d   :  { %v180_v19 = vrot.slane %v172_v10, %v306_v41 }
  0x8e   :  { %47 = vrot.lane.b32.xlu1 %v44_v21, %s235_s26  ;;  %45 = vrot.lane.b32.xlu0 %v43_v20, %s235_s26 }
  0x8f   :  { %vm182_vm15 = vcmp.eq.s32.totalorder %v180_v19, 1 }
  0x90   :  { %v119_v25 = vpop.permute.xlu1 %118 }
  0x91   :  { %v121_v28 = vadd.f32 %v119_v25, %v115_v26  ;;  %v122_v29 = vadd.f32 %v119_v25, %v116_v27 }
  0x92   :  { %87 = vrot.lane.b32.xlu1 %v84_v24, %s236_s2  ;;  %85 = vrot.lane.b32.xlu0 %v83_v23, %s236_s2 }
  0x95   :  { %v157_v30 = vpop.permute.xlu1 %156 }
  0x96   :  { %125 = vrot.lane.b32.xlu1 %v122_v29, %s237_s27  ;;  %123 = vrot.lane.b32.xlu0 %v121_v28, %s237_s27  ;;  %v159_v33 = vadd.f32 %v157_v30, %v153_v31  ;;  %v160_v34 = vadd.f32 %v157_v30, %v154_v32 }
  0x9a   :  { %163 = vrot.lane.b32.xlu1 %v160_v34, %s238_s28  ;;  %161 = vrot.lane.b32.xlu0 %v159_v33, %s238_s28 }
 0x100   :  { %v48_v46 = vpop.permute.xlu1 %47  ;;  %v46_v47 = vpop.permute.xlu0 %45 }
 0x101   :  { %v52_v49 = vsel %vm51_vm2, %v46_v47, %v48_v46  ;;  %v53_v50 = vsel %vm51_vm2, %v48_v46, %v46_v47 }
 0x102   :  { %v54_v51 = vadd.f32 %v53_v50, %v281_v13  ;;  %v55_v52 = vadd.f32 %v52_v49, %v286_v14 }
 0x104   :  { %v56_v56 = vmax.f32 %v54_v51, 0.0  ;;  %v57_v57 = vmax.f32 %v55_v52, 0.0  ;;  %v88_v58 = vpop.permute.xlu1 %87  ;;  %v86_v59 = vpop.permute.xlu0 %85 }
 0x105   :  { %v90_v61 = vsel %vm89_vm4, %v86_v59, %v88_v58  ;;  %v91_v62 = vsel %vm89_vm4, %v88_v58, %v86_v59 }
 0x106   :  { %v69_v63 = vsel %vm67_vm5, %v281_v13, %v56_v56  ;;  %v70_v0 = vsel %vm68_vm6, %v286_v14, %v57_v57  ;;  %v92_v2 = vadd.f32 %v90_v61, %v281_v13  ;;  %v93_v3 = vadd.f32 %v91_v62, %v286_v14 }
 0x107   :  { %71 = vst [vmem:[%s382_s3] sm:$0xff] %v69_v63  ;;  %72 = vst [vmem:[%s382_s3 + $0x8] sm:$0xff] %v70_v0 }
 0x108   :  { %v94_v6 = vmax.f32 %v92_v2, 0.0  ;;  %v95_v7 = vmax.f32 %v93_v3, 0.0  ;;  %v126_v8 = vpop.permute.xlu1 %125  ;;  %v124_v9 = vpop.permute.xlu0 %123 }
 0x109   :  { %v128_v11 = vsel %vm127_vm7, %v124_v9, %v126_v8  ;;  %v129_v12 = vsel %vm127_vm7, %v126_v8, %v124_v9 }
 0x10a   :  { %v107_v15 = vsel %vm105_vm9, %v281_v13, %v94_v6  ;;  %v108_v16 = vsel %vm106_vm10, %v286_v14, %v95_v7  ;;  %v130_v17 = vadd.f32 %v128_v11, %v281_v13  ;;  %v131_v18 = vadd.f32 %v129_v12, %v286_v14 }
 0x10b   :  { %109 = vst [vmem:[%s383_s4] sm:$0xff] %v107_v15  ;;  %110 = vst [vmem:[%s383_s4 + $0x8] sm:$0xff] %v108_v16 }
 0x10c   :  { %v132_v20 = vmax.f32 %v130_v17, 0.0  ;;  %v133_v21 = vmax.f32 %v131_v18, 0.0  ;;  %v164_v22 = vpop.permute.xlu1 %163  ;;  %v162_v23 = vpop.permute.xlu0 %161 }
 0x10d   :  { %v166_v24 = vsel %vm165_vm11, %v162_v23, %v164_v22  ;;  %v167_v25 = vsel %vm165_vm11, %v164_v22, %v162_v23 }
 0x10e   :  { %v145_v26 = vsel %vm143_vm12, %v281_v13, %v132_v20  ;;  %v146_v27 = vsel %vm144_vm13, %v286_v14, %v133_v21  ;;  %v168_v28 = vadd.f32 %v167_v25, %v281_v13  ;;  %v169_v29 = vadd.f32 %v166_v24, %v286_v14 }
 0x10f   :  { %147 = vst [vmem:[%s384_s5] sm:$0xff] %v145_v26  ;;  %148 = vst [vmem:[%s384_s5 + $0x8] sm:$0xff] %v146_v27 }
 0x110   :  { %v170_v30 = vmax.f32 %v168_v28, 0.0  ;;  %v171_v31 = vmax.f32 %v169_v29, 0.0 }
 0x112   :  { %v183_v32 = vsel %vm181_vm14, %v281_v13, %v170_v30  ;;  %v184_v33 = vsel %vm182_vm15, %v286_v14, %v171_v31 }
 0x113   :  { %185 = vst [vmem:[%s385_s6] sm:$0xff] %v183_v32  ;;  %186 = vst [vmem:[%s385_s6 + $0x8] sm:$0xff] %v184_v33 }

</bundles_post_ra>
